<compile_context>
chip_gen: v6e
topology: v6e:2x2x1
jax: 0.10.0
libtpu: 0.0.40
codegen_flags: <defaults>
</compile_context>

<pallas_src>
import functools
import itertools

import numpy as np
import jax
import jax.numpy as jnp
from jax.experimental import pallas as pl
from jax.experimental.pallas import tpu as pltpu


# ----------------------------- Pallas kernel ---------------------------------

def _cost_matrix_kernel(pred_ref, tgt_t_ref, cls_ref, lsum_ref, out_ref,
                        mask_acc, dice_acc, ce_acc, prob_acc, *,
                        mask_coef, dice_coef, class_coef, inv_num_points):
    p = pl.program_id(1)

    @pl.when(p == 0)
    def _():
        mask_acc[...] = jnp.zeros_like(mask_acc)
        dice_acc[...] = jnp.zeros_like(dice_acc)
        ce_acc[...] = jnp.zeros_like(ce_acc)
        prob_acc[...] = jnp.zeros_like(prob_acc)

    x = pred_ref[0].astype(jnp.float32)        # [Q, TP]   predicted logits (bf16 DMA, f32 math)
    labels_t = tgt_t_ref[0]                    # [TP, Tpad] target mask values (bf16)

    # One exp per element, reused for both BCE(target=0) and sigmoid.
    e = jnp.exp(-jnp.abs(x))                                   # EUP
    softplus_x = jnp.maximum(x, 0.0) + jnp.log1p(e)            # BCE with target 0
    recip = pl.reciprocal(1.0 + e, approx=True)                # EUP vrcp (approx)
    probs = jnp.where(x >= 0.0, recip, e * recip)              # sigmoid(x)

    # Two MXU matmuls sharing the labels RHS (no concat copy / relayout), f32 accumulation:
    #   mask_acc += (-x/P)   @ labels^T   (linear part of pairwise BCE; softplus part is a rowsum)
    #   dice_acc += (2*probs)@ labels^T   (dice numerator)
    mask_acc[...] += jnp.dot((x * (-inv_num_points)).astype(jnp.bfloat16), labels_t,
                             preferred_element_type=jnp.float32)
    dice_acc[...] += jnp.dot((2.0 * probs).astype(jnp.bfloat16), labels_t,
                             preferred_element_type=jnp.float32)

    # Row reductions ride the XLU slot.
    ce_acc[...] += jnp.sum(softplus_x, axis=-1, keepdims=True) * inv_num_points
    prob_acc[...] += jnp.sum(probs, axis=-1, keepdims=True)

    @pl.when(p == pl.num_programs(1) - 1)
    def _():
        label_sum = lsum_ref[0]                                # [1, Tpad], precomputed f32
        cost_mask = mask_acc[...] + ce_acc[...]
        denom = prob_acc[...] + label_sum
        cost_dice = 1.0 - (dice_acc[...] + 1.0) / (denom + 1.0)
        cm = mask_coef * cost_mask + dice_coef * cost_dice
        cm = cm + class_coef * cls_ref[0].astype(jnp.float32)
        out_ref[0] = jnp.clip(cm, -1e10, 1e10)


def cost_matrices_pallas(pred_pts, tgt_pts_t, cost_class, label_sum,
                         mask_coef, dice_coef, class_coef, *, num_points, point_tile):
    """pred_pts: [B,Q,Ppad] bf16, tgt_pts_t: [B,Ppad,Tpad] bf16, cost_class: [B,Q,Tpad] f32,
    label_sum: [B,1,Tpad] f32  ->  cost matrices [B,Q,Tpad] f32."""
    B, Q, Ppad = pred_pts.shape
    Tpad = tgt_pts_t.shape[2]
    TP = int(point_tile)
    assert Ppad % TP == 0
    num_p_tiles = Ppad // TP

    kernel = functools.partial(
        _cost_matrix_kernel,
        mask_coef=float(mask_coef),
        dice_coef=float(dice_coef),
        class_coef=float(class_coef),
        inv_num_points=1.0 / float(num_points),
    )

    # VMEM budget: double-buffered tiled inputs + grid-resident blocks + scratch + f32 temps.
    vmem_bytes = (
        2 * Q * TP * 2           # pred double buffer (bf16)
        + 2 * TP * Tpad * 2      # labels double buffer (bf16)
        + 2 * Q * Tpad * 4       # class-cost block (grid-resident)
        + 2 * 8 * Tpad * 4       # label-sum block (sublane padded)
        + 2 * Q * Tpad * 4       # output block
        + 2 * Q * Tpad * 4       # mask/dice accumulators
        + 2 * Q * 128 * 4        # row-sum accumulators (lane padded)
        + 10 * Q * TP * 4        # in-kernel f32 temporaries headroom
    )
    # Cap at 48 MiB so the same kernel fits v7x's 64 MiB physical VMEM with headroom.
    vmem_limit = int(min(48 * 2**20, max(16 * 2**20, 2 * vmem_bytes)))

    return pl.pallas_call(
        kernel,
        out_shape=jax.ShapeDtypeStruct((B, Q, Tpad), jnp.float32),
        grid_spec=pltpu.PrefetchScalarGridSpec(
            num_scalar_prefetch=0,
            grid=(B, num_p_tiles),
            in_specs=[
                pl.BlockSpec((1, Q, TP), lambda b, p: (b, 0, p)),      # pred: tiled over P
                pl.BlockSpec((1, TP, Tpad), lambda b, p: (b, p, 0)),   # labels^T: tiled over P
                pl.BlockSpec((1, Q, Tpad), lambda b, p: (b, 0, 0)),    # class cost: resident
                pl.BlockSpec((1, 1, Tpad), lambda b, p: (b, 0, 0)),    # label colsum: resident
            ],
            out_specs=pl.BlockSpec((1, Q, Tpad), lambda b, p: (b, 0, 0)),  # accumulator output
            scratch_shapes=[
                pltpu.VMEM((Q, Tpad), jnp.float32),    # mask (BCE linear part) accumulator
                pltpu.VMEM((Q, Tpad), jnp.float32),    # dice numerator accumulator
                pltpu.VMEM((Q, 1), jnp.float32),       # rowsum(softplus)/P accumulator
                pltpu.VMEM((Q, 1), jnp.float32),       # rowsum(sigmoid) accumulator
            ]),
        compiler_params=pltpu.CompilerParams(
            dimension_semantics=("parallel", "arbitrary"),
            vmem_limit_bytes=vmem_limit),
    )(pred_pts, tgt_pts_t, cost_class, label_sum)


# ------------------------------ JAX glue --------------------------------------

def sample_point(mask, coords):
    """grid_sample(mode='bilinear', padding_mode='zeros', align_corners=False) on [N,H,W]
    masks with normalized coords in [0,1) (x=width, y=height). Returns [N, P]."""
    # TODO(synk): point sampling is a data-dependent gather; kept in XLA rather than a
    # Pallas DMA-gather kernel (cheap relative to the cost matrix at these sizes).
    mask = mask.astype(jnp.float32)
    H, W = mask.shape[-2], mask.shape[-1]
    x = coords[:, 0] * W - 0.5
    y = coords[:, 1] * H - 0.5
    x0 = jnp.floor(x)
    y0 = jnp.floor(y)
    x1 = x0 + 1.0
    y1 = y0 + 1.0
    wx1 = x - x0
    wx0 = 1.0 - wx1
    wy1 = y - y0
    wy0 = 1.0 - wy1

    def gather(xi, yi):
        xi_i = xi.astype(jnp.int32)
        yi_i = yi.astype(jnp.int32)
        valid = ((xi_i >= 0) & (xi_i < W) & (yi_i >= 0) & (yi_i < H)).astype(jnp.float32)
        xi_c = jnp.clip(xi_i, 0, W - 1)
        yi_c = jnp.clip(yi_i, 0, H - 1)
        vals = mask[:, yi_c, xi_c]            # [N, P]
        return vals * valid[None, :]

    v00 = gather(x0, y0)
    v01 = gather(x1, y0)
    v10 = gather(x0, y1)
    v11 = gather(x1, y1)
    out = (v00 * (wx0 * wy0)[None, :] + v01 * (wx1 * wy0)[None, :]
           + v10 * (wx0 * wy1)[None, :] + v11 * (wx1 * wy1)[None, :])
    return out


def linear_sum_assignment_np(cost):
    """Exact min-cost assignment for small rectangular matrices (brute force)."""
    # TODO(synk): Hungarian assignment is a sequential host-side combinatorial solve with no
    # clean Pallas equivalent; brute force is fine for tiny T but use scipy/Jonker-Volgenant
    # at production target counts.
    cost = np.asarray(cost, dtype=np.float64)
    Q, T = cost.shape
    if T <= Q:
        best_val, best_perm = None, None
        cols = np.arange(T)
        for perm in itertools.permutations(range(Q), T):
            s = cost[list(perm), cols].sum()
            if best_val is None or s < best_val:
                best_val, best_perm = s, perm
        rows = np.array(best_perm, dtype=np.int32)
        cols = cols.astype(np.int32)
    else:
        best_val, best_perm = None, None
        rows = np.arange(Q)
        for perm in itertools.permutations(range(T), Q):
            s = cost[rows, list(perm)].sum()
            if best_val is None or s < best_val:
                best_val, best_perm = s, perm
        cols = np.array(best_perm, dtype=np.int32)
        rows = rows.astype(np.int32)
    order = np.argsort(rows, kind="stable")
    return rows[order], cols[order]


class Mask2formerMatcher:
    def __init__(self, num_points, mask_coefficient, dice_coefficient, class_coefficient=None):
        self.num_points = num_points
        self.mask_coefficient = mask_coefficient
        self.dice_coefficient = dice_coefficient
        self.class_coefficient = class_coefficient

    def __call__(self, masks_queries_logits, mask_labels,
                 class_queries_logits=None, class_labels=None, *, key):
        B, Q, H, W = masks_queries_logits.shape
        P = self.num_points
        t_sizes = [int(m.shape[0]) for m in mask_labels]
        t_max = max(t_sizes)
        # Lane-dense padded target axis (multiple of 128). Padded columns are sliced off on
        # the host before assignment, so phantom targets can never be matched.
        t_pad = max(128, ((t_max + 127) // 128) * 128)

        # Point-axis tile: one tile for small P, else 512 (sweep 512-2048 at production P).
        if P <= 1024:
            tp = ((P + 127) // 128) * 128
        else:
            tp = 512
        p_pad = ((P + tp - 1) // tp) * tp

        # Fresh random sample points per batch item (torch.rand(1, num_points, 2) equivalent).
        coords = jax.random.uniform(key, (B, P, 2), dtype=jnp.float32)

        pred_pts = jax.vmap(sample_point)(
            masks_queries_logits.astype(jnp.float32), coords)               # [B, Q, P]

        tgt_stack = jnp.stack([
            jnp.pad(m.astype(jnp.float32),
                    ((0, t_max - m.shape[0]), (0, 0), (0, 0)))
            for m in mask_labels])                                          # [B, Tmax, H, W]
        tgt_pts = jax.vmap(sample_point)(tgt_stack, coords)                 # [B, Tmax, P]

        # Target column sums (dice denominator term), computed once in f32 on the wrapper
        # side so the kernel never upcasts the full labels tile.
        label_sum = jnp.sum(tgt_pts, axis=-1)                               # [B, Tmax]
        label_sum = jnp.pad(label_sum, ((0, 0), (0, t_pad - t_max)))        # [B, Tpad]
        label_sum = label_sum[:, None, :]                                   # [B, 1, Tpad]

        # Pad targets to (Tpad, Ppad), cast to bf16 BEFORE the transpose (half the bytes
        # moved by the XLA transpose), then transpose so the kernel's RHS is [Ppad, Tpad].
        tgt_pts = jnp.pad(tgt_pts, ((0, 0), (0, t_pad - t_max), (0, p_pad - P)))
        tgt_pts_t = jnp.transpose(tgt_pts.astype(jnp.bfloat16), (0, 2, 1))  # [B, Ppad, Tpad]

        # Pad the points axis of pred with a large-negative sentinel: softplus and sigmoid
        # underflow to exactly 0 there, and the padded label rows are 0, so padded points
        # contribute nothing.  DMA pred as bf16 (dominant input; f32 math inside the kernel).
        pred_pts = jnp.pad(pred_pts, ((0, 0), (0, 0), (0, p_pad - P)),
                           constant_values=-1e4)
        pred_pts = pred_pts.astype(jnp.bfloat16)                            # [B, Q, Ppad]

        if class_queries_logits is not None and class_labels is not None:
            assert self.class_coefficient is not None
            probs = jax.nn.softmax(class_queries_logits.astype(jnp.float32), axis=-1)
            cost_class = jnp.stack([
                jnp.pad(-probs[i][:, class_labels[i]],
                        ((0, 0), (0, t_pad - t_sizes[i])))
                for i in range(B)])                                         # [B, Q, Tpad]
            class_coef = self.class_coefficient
        else:
            cost_class = jnp.zeros((B, Q, t_pad), jnp.float32)
            class_coef = 0.0

        # ONE batched kernel launch + ONE device->host transfer for the whole batch.
        cost_all = cost_matrices_pallas(
            pred_pts, tgt_pts_t, cost_class, label_sum,
            self.mask_coefficient, self.dice_coefficient, class_coef,
            num_points=P, point_tile=tp)
        cost_all = np.asarray(jax.device_get(cost_all))                     # [B, Q, Tpad]

        indices_list = []
        for i, t in enumerate(t_sizes):
            r, c = linear_sum_assignment_np(cost_all[i, :, :t])
            indices_list.append((jnp.asarray(r, dtype=jnp.int32),
                                 jnp.asarray(c, dtype=jnp.int32)))
        return indices_list


# --------------------------------- main ---------------------------------------

if __name__ == "__main__":
    key = jax.random.PRNGKey(0)
    B, Q, H, W = 2, 8, 16, 16
    NUM_CLASSES = 6           # including "no-object"
    NUM_POINTS = 128
    target_counts = [4, 5]

    k1, k2, k3, k4, k5 = jax.random.split(key, 5)

    masks_queries_logits = jax.random.normal(k1, (B, Q, H, W), dtype=jnp.float32)
    class_queries_logits = jax.random.normal(k2, (B, Q, NUM_CLASSES), dtype=jnp.float32)

    mask_labels = []
    class_labels = []
    lbl_keys = jax.random.split(k3, B)
    cls_keys = jax.random.split(k4, B)
    for i, t in enumerate(target_counts):
        m = (jax.random.uniform(lbl_keys[i], (t, H, W)) > 0.5).astype(jnp.float32)
        mask_labels.append(m)
        class_labels.append(jax.random.randint(cls_keys[i], (t,), 0, NUM_CLASSES - 1))

    matcher = Mask2formerMatcher(num_points=NUM_POINTS,
                                 mask_coefficient=5.0,
                                 dice_coefficient=5.0,
                                 class_coefficient=2.0)

    out = matcher(masks_queries_logits, mask_labels,
                  class_queries_logits, class_labels, key=k5)
    out = jax.block_until_ready(out)

    # sanity: one (row_idx, col_idx) pair per batch item, lengths = num targets
    assert len(out) == B
    for (r, c), t in zip(out, target_counts):
        assert r.shape == (t,) and c.shape == (t,)
        assert r.dtype == jnp.int32 and c.dtype == jnp.int32

    print("KERNEL_OK")
</pallas_src>

<mosaic_0001>
module attributes {stable_mosaic.version = 11 : i64} {
  func.func @_cost_matrix_kernel(%arg0: i32, %arg1: i32, %arg2: memref<1x8x128xbf16, #tpu.memory_space<vmem>>, %arg3: memref<1x128x128xbf16, #tpu.memory_space<vmem>>, %arg4: memref<1x8x128xf32, #tpu.memory_space<vmem>>, %arg5: memref<1x1x128xf32, #tpu.memory_space<vmem>>, %arg6: memref<1x8x128xf32, #tpu.memory_space<vmem>>, %arg7: memref<8x128xf32, #tpu.memory_space<vmem>>, %arg8: memref<8x128xf32, #tpu.memory_space<vmem>>, %arg9: memref<8x1xf32, #tpu.memory_space<vmem>>, %arg10: memref<8x1xf32, #tpu.memory_space<vmem>>) attributes {dimension_semantics = [#tpu.dimension_semantics<parallel>, #tpu.dimension_semantics<arbitrary>], iteration_bounds = array<i64: 2, 1>, scalar_prefetch = 0 : i64, scratch_operands = 4 : i64, tpu.core_type = #tpu.core_type<tc>, window_params = [{transform_indices = @transform_0, window_bounds = array<i64: 1, 8, 128>}, {transform_indices = @transform_1, window_bounds = array<i64: 1, 128, 128>}, {transform_indices = @transform_2, window_bounds = array<i64: 1, 8, 128>}, {transform_indices = @transform_3, window_bounds = array<i64: 1, 1, 128>}, {transform_indices = @transform_4, window_bounds = array<i64: 1, 8, 128>}]} {
    %c0_i32 = arith.constant 0 : i32
    %0 = arith.cmpi eq, %arg1, %c0_i32 : i32
    %1 = arith.extui %0 : i1 to i32
    %c0_i32_0 = arith.constant 0 : i32
    %2 = arith.cmpi ne, %1, %c0_i32_0 : i32
    scf.if %2 {
      %cst_34 = arith.constant 0.000000e+00 : f32
      %52 = vector.broadcast %cst_34 : f32 to vector<8x128xf32>
      %c0_35 = arith.constant 0 : index
      %c0_36 = arith.constant 0 : index
      %53 = vector.load %arg7[%c0_35, %c0_36] : memref<8x128xf32, #tpu.memory_space<vmem>>, vector<8x128xf32>
      tpu.vector_store %arg7[%c0_35, %c0_36], %52 {strides = array<i32>} : memref<8x128xf32, #tpu.memory_space<vmem>>, vector<8x128xf32>,
      %cst_37 = arith.constant 0.000000e+00 : f32
      %54 = vector.broadcast %cst_37 : f32 to vector<8x128xf32>
      %c0_38 = arith.constant 0 : index
      %c0_39 = arith.constant 0 : index
      %55 = vector.load %arg8[%c0_38, %c0_39] : memref<8x128xf32, #tpu.memory_space<vmem>>, vector<8x128xf32>
      tpu.vector_store %arg8[%c0_38, %c0_39], %54 {strides = array<i32>} : memref<8x128xf32, #tpu.memory_space<vmem>>, vector<8x128xf32>,
      %cst_40 = arith.constant 0.000000e+00 : f32
      %56 = vector.broadcast %cst_40 : f32 to vector<8x1xf32>
      %c0_41 = arith.constant 0 : index
      %c0_42 = arith.constant 0 : index
      %57 = vector.load %arg9[%c0_41, %c0_42] : memref<8x1xf32, #tpu.memory_space<vmem>>, vector<8x1xf32>
      tpu.vector_store %arg9[%c0_41, %c0_42], %56 {strides = array<i32>} : memref<8x1xf32, #tpu.memory_space<vmem>>, vector<8x1xf32>,
      %cst_43 = arith.constant 0.000000e+00 : f32
      %58 = vector.broadcast %cst_43 : f32 to vector<8x1xf32>
      %c0_44 = arith.constant 0 : index
      %c0_45 = arith.constant 0 : index
      %59 = vector.load %arg10[%c0_44, %c0_45] : memref<8x1xf32, #tpu.memory_space<vmem>>, vector<8x1xf32>
      tpu.vector_store %arg10[%c0_44, %c0_45], %58 {strides = array<i32>} : memref<8x1xf32, #tpu.memory_space<vmem>>, vector<8x1xf32>,
    } else {
    }
    %c0 = arith.constant 0 : index
    %c0_1 = arith.constant 0 : index
    %c0_2 = arith.constant 0 : index
    %3 = vector.load %arg2[%c0, %c0_1, %c0_2] : memref<1x8x128xbf16, #tpu.memory_space<vmem>>, vector<1x8x128xbf16>
    %4 = vector.shape_cast %3 : vector<1x8x128xbf16> to vector<8x128xbf16>
    %5 = arith.extf %4 : vector<8x128xbf16> to vector<8x128xf32>
    %c0_3 = arith.constant 0 : index
    %c0_4 = arith.constant 0 : index
    %c0_5 = arith.constant 0 : index
    %6 = vector.load %arg3[%c0_3, %c0_4, %c0_5] : memref<1x128x128xbf16, #tpu.memory_space<vmem>>, vector<1x128x128xbf16>
    %7 = vector.shape_cast %6 : vector<1x128x128xbf16> to vector<128x128xbf16>
    %8 = math.absf %5 : vector<8x128xf32>
    %cst = arith.constant 0.000000e+00 : f32
    %9 = vector.broadcast %cst : f32 to vector<8x128xf32>
    %10 = arith.subf %9, %8 : vector<8x128xf32>
    %11 = math.exp %10 : vector<8x128xf32>
    %cst_6 = arith.constant 0.000000e+00 : f32
    %12 = vector.broadcast %cst_6 : f32 to vector<8x128xf32>
    %13 = arith.maximumf %5, %12 : vector<8x128xf32>
    %14 = math.log1p %11 : vector<8x128xf32>
    %15 = arith.addf %13, %14 : vector<8x128xf32>
    %cst_7 = arith.constant 1.000000e+00 : f32
    %16 = vector.broadcast %cst_7 : f32 to vector<8x128xf32>
    %17 = arith.addf %16, %11 : vector<8x128xf32>
    %18 = tpu.reciprocal %17 {approx = true} : vector<8x128xf32> -> vector<8x128xf32>
    %cst_8 = arith.constant 0.000000e+00 : f32
    %19 = vector.broadcast %cst_8 : f32 to vector<8x128xf32>
    %20 = arith.cmpf oge, %5, %19 : vector<8x128xf32>
    %21 = arith.mulf %11, %18 : vector<8x128xf32>
    %22 = arith.select %20, %18, %21 : vector<8x128xi1>, vector<8x128xf32>
    %c0_9 = arith.constant 0 : index
    %c0_10 = arith.constant 0 : index
    %23 = vector.load %arg7[%c0_9, %c0_10] : memref<8x128xf32, #tpu.memory_space<vmem>>, vector<8x128xf32>
    %cst_11 = arith.constant -7.812500e-03 : f32
    %24 = vector.broadcast %cst_11 : f32 to vector<8x128xf32>
    %25 = arith.mulf %5, %24 : vector<8x128xf32>
    %26 = arith.truncf %25 : vector<8x128xf32> to vector<8x128xbf16>
    %cst_12 = arith.constant dense<0.000000e+00> : vector<8x128xf32>
    %27 = tpu.matmul %26, %7, %cst_12 {dimension_numbers = #tpu.dot_dimension_numbers<[1], [0], [0], [1], [0, 0, 1, 1], [], []>} : vector<8x128xbf16>, vector<128x128xbf16>, vector<8x128xf32> -> vector<8x128xf32>
    %28 = arith.addf %23, %27 : vector<8x128xf32>
    %c0_13 = arith.constant 0 : index
    %c0_14 = arith.constant 0 : index
    %29 = vector.load %arg7[%c0_13, %c0_14] : memref<8x128xf32, #tpu.memory_space<vmem>>, vector<8x128xf32>
    tpu.vector_store %arg7[%c0_13, %c0_14], %28 {strides = array<i32>} : memref<8x128xf32, #tpu.memory_space<vmem>>, vector<8x128xf32>,
    %c0_15 = arith.constant 0 : index
    %c0_16 = arith.constant 0 : index
    %30 = vector.load %arg8[%c0_15, %c0_16] : memref<8x128xf32, #tpu.memory_space<vmem>>, vector<8x128xf32>
    %cst_17 = arith.constant 2.000000e+00 : f32
    %31 = vector.broadcast %cst_17 : f32 to vector<8x128xf32>
    %32 = arith.mulf %31, %22 : vector<8x128xf32>
    %33 = arith.truncf %32 : vector<8x128xf32> to vector<8x128xbf16>
    %cst_18 = arith.constant dense<0.000000e+00> : vector<8x128xf32>
    %34 = tpu.matmul %33, %7, %cst_18 {dimension_numbers = #tpu.dot_dimension_numbers<[1], [0], [0], [1], [0, 0, 1, 1], [], []>} : vector<8x128xbf16>, vector<128x128xbf16>, vector<8x128xf32> -> vector<8x128xf32>
    %35 = arith.addf %30, %34 : vector<8x128xf32>
    %c0_19 = arith.constant 0 : index
    %c0_20 = arith.constant 0 : index
    %36 = vector.load %arg8[%c0_19, %c0_20] : memref<8x128xf32, #tpu.memory_space<vmem>>, vector<8x128xf32>
    tpu.vector_store %arg8[%c0_19, %c0_20], %35 {strides = array<i32>} : memref<8x128xf32, #tpu.memory_space<vmem>>, vector<8x128xf32>,
    %c0_21 = arith.constant 0 : index
    %c0_22 = arith.constant 0 : index
    %37 = vector.load %arg9[%c0_21, %c0_22] : memref<8x1xf32, #tpu.memory_space<vmem>>, vector<8x1xf32>
    %cst_23 = arith.constant dense<0.000000e+00> : vector<8xf32>
    %38 = vector.multi_reduction <add>, %15, %cst_23 [1] : vector<8x128xf32> to vector<8xf32>
    %39 = vector.shape_cast %38 : vector<8xf32> to vector<8x1xf32>
    %cst_24 = arith.constant 7.812500e-03 : f32
    %40 = vector.broadcast %cst_24 : f32 to vector<8x1xf32>
    %41 = arith.mulf %39, %40 : vector<8x1xf32>
    %42 = arith.addf %37, %41 : vector<8x1xf32>
    %c0_25 = arith.constant 0 : index
    %c0_26 = arith.constant 0 : index
    %43 = vector.load %arg9[%c0_25, %c0_26] : memref<8x1xf32, #tpu.memory_space<vmem>>, vector<8x1xf32>
    tpu.vector_store %arg9[%c0_25, %c0_26], %42 {strides = array<i32>} : memref<8x1xf32, #tpu.memory_space<vmem>>, vector<8x1xf32>,
    %c0_27 = arith.constant 0 : index
    %c0_28 = arith.constant 0 : index
    %44 = vector.load %arg10[%c0_27, %c0_28] : memref<8x1xf32, #tpu.memory_space<vmem>>, vector<8x1xf32>
    %cst_29 = arith.constant dense<0.000000e+00> : vector<8xf32>
    %45 = vector.multi_reduction <add>, %22, %cst_29 [1] : vector<8x128xf32> to vector<8xf32>
    %46 = vector.shape_cast %45 : vector<8xf32> to vector<8x1xf32>
    %47 = arith.addf %44, %46 : vector<8x1xf32>
    %c0_30 = arith.constant 0 : index
    %c0_31 = arith.constant 0 : index
    %48 = vector.load %arg10[%c0_30, %c0_31] : memref<8x1xf32, #tpu.memory_space<vmem>>, vector<8x1xf32>
    tpu.vector_store %arg10[%c0_30, %c0_31], %47 {strides = array<i32>} : memref<8x1xf32, #tpu.memory_space<vmem>>, vector<8x1xf32>,
    %c0_i32_32 = arith.constant 0 : i32
    %49 = arith.cmpi eq, %arg1, %c0_i32_32 : i32
    %50 = arith.extui %49 : i1 to i32
    %c0_i32_33 = arith.constant 0 : i32
    %51 = arith.cmpi ne, %50, %c0_i32_33 : i32
    scf.if %51 {
      %c0_34 = arith.constant 0 : index
      %c0_35 = arith.constant 0 : index
      %c0_36 = arith.constant 0 : index
      %52 = vector.load %arg5[%c0_34, %c0_35, %c0_36] : memref<1x1x128xf32, #tpu.memory_space<vmem>>, vector<1x1x128xf32>
      %53 = vector.shape_cast %52 : vector<1x1x128xf32> to vector<1x128xf32>
      %c0_37 = arith.constant 0 : index
      %c0_38 = arith.constant 0 : index
      %54 = vector.load %arg7[%c0_37, %c0_38] : memref<8x128xf32, #tpu.memory_space<vmem>>, vector<8x128xf32>
      %c0_39 = arith.constant 0 : index
      %c0_40 = arith.constant 0 : index
      %55 = vector.load %arg9[%c0_39, %c0_40] : memref<8x1xf32, #tpu.memory_space<vmem>>, vector<8x1xf32>
      %56 = vector.broadcast %55 : vector<8x1xf32> to vector<8x128xf32>
      %57 = arith.addf %54, %56 : vector<8x128xf32>
      %c0_41 = arith.constant 0 : index
      %c0_42 = arith.constant 0 : index
      %58 = vector.load %arg10[%c0_41, %c0_42] : memref<8x1xf32, #tpu.memory_space<vmem>>, vector<8x1xf32>
      %59 = vector.broadcast %58 : vector<8x1xf32> to vector<8x128xf32>
      %60 = vector.broadcast %53 : vector<1x128xf32> to vector<8x128xf32>
      %61 = arith.addf %59, %60 : vector<8x128xf32>
      %c0_43 = arith.constant 0 : index
      %c0_44 = arith.constant 0 : index
      %62 = vector.load %arg8[%c0_43, %c0_44] : memref<8x128xf32, #tpu.memory_space<vmem>>, vector<8x128xf32>
      %cst_45 = arith.constant 1.000000e+00 : f32
      %63 = vector.broadcast %cst_45 : f32 to vector<8x128xf32>
      %64 = arith.addf %62, %63 : vector<8x128xf32>
      %cst_46 = arith.constant 1.000000e+00 : f32
      %65 = vector.broadcast %cst_46 : f32 to vector<8x128xf32>
      %66 = arith.addf %61, %65 : vector<8x128xf32>
      %67 = arith.divf %64, %66 : vector<8x128xf32>
      %cst_47 = arith.constant 1.000000e+00 : f32
      %68 = vector.broadcast %cst_47 : f32 to vector<8x128xf32>
      %69 = arith.subf %68, %67 : vector<8x128xf32>
      %cst_48 = arith.constant 5.000000e+00 : f32
      %70 = vector.broadcast %cst_48 : f32 to vector<8x128xf32>
      %71 = arith.mulf %70, %57 : vector<8x128xf32>
      %cst_49 = arith.constant 5.000000e+00 : f32
      %72 = vector.broadcast %cst_49 : f32 to vector<8x128xf32>
      %73 = arith.mulf %72, %69 : vector<8x128xf32>
      %74 = arith.addf %71, %73 : vector<8x128xf32>
      %c0_50 = arith.constant 0 : index
      %c0_51 = arith.constant 0 : index
      %c0_52 = arith.constant 0 : index
      %75 = vector.load %arg4[%c0_50, %c0_51, %c0_52] : memref<1x8x128xf32, #tpu.memory_space<vmem>>, vector<1x8x128xf32>
      %76 = vector.shape_cast %75 : vector<1x8x128xf32> to vector<8x128xf32>
      %cst_53 = arith.constant 2.000000e+00 : f32
      %77 = vector.broadcast %cst_53 : f32 to vector<8x128xf32>
      %78 = arith.mulf %77, %76 : vector<8x128xf32>
      %79 = arith.addf %74, %78 : vector<8x128xf32>
      %cst_54 = arith.constant -1.000000e+10 : f32
      %cst_55 = arith.constant 1.000000e+10 : f32
      %80 = vector.broadcast %cst_54 : f32 to vector<8x128xf32>
      %81 = arith.maximumf %80, %79 : vector<8x128xf32>
      %82 = vector.broadcast %cst_55 : f32 to vector<8x128xf32>
      %83 = arith.minimumf %82, %81 : vector<8x128xf32>
      %c0_56 = arith.constant 0 : index
      %c0_57 = arith.constant 0 : index
      %c0_58 = arith.constant 0 : index
      %84 = vector.load %arg6[%c0_56, %c0_57, %c0_58] : memref<1x8x128xf32, #tpu.memory_space<vmem>>, vector<1x8x128xf32>
      %85 = vector.shape_cast %84 : vector<1x8x128xf32> to vector<8x128xf32>
      %86 = vector.shape_cast %83 : vector<8x128xf32> to vector<1x8x128xf32>
      tpu.vector_store %arg6[%c0_56, %c0_57, %c0_58], %86 {strides = array<i32>} : memref<1x8x128xf32, #tpu.memory_space<vmem>>, vector<1x8x128xf32>,
    } else {
    }
    return
  }
  func.func @transform_0(%arg0: i32, %arg1: i32) -> (i32, i32, i32) {
    %c0_i32 = arith.constant 0 : i32
    %c0_i32_0 = arith.constant 0 : i32
    return %arg0, %c0_i32, %arg1 : i32, i32, i32
  }
  func.func @transform_1(%arg0: i32, %arg1: i32) -> (i32, i32, i32) {
    %c0_i32 = arith.constant 0 : i32
    %c0_i32_0 = arith.constant 0 : i32
    return %arg0, %arg1, %c0_i32 : i32, i32, i32
  }
  func.func @transform_2(%arg0: i32, %arg1: i32) -> (i32, i32, i32) {
    %c0_i32 = arith.constant 0 : i32
    %c0_i32_0 = arith.constant 0 : i32
    %c0_i32_1 = arith.constant 0 : i32
    return %arg0, %c0_i32, %c0_i32_0 : i32, i32, i32
  }
  func.func @transform_3(%arg0: i32, %arg1: i32) -> (i32, i32, i32) {
    %c0_i32 = arith.constant 0 : i32
    %c0_i32_0 = arith.constant 0 : i32
    %c0_i32_1 = arith.constant 0 : i32
    return %arg0, %c0_i32, %c0_i32_0 : i32, i32, i32
  }
  func.func @transform_4(%arg0: i32, %arg1: i32) -> (i32, i32, i32) {
    %c0_i32 = arith.constant 0 : i32
    %c0_i32_0 = arith.constant 0 : i32
    %c0_i32_1 = arith.constant 0 : i32
    return %arg0, %c0_i32, %c0_i32_0 : i32, i32, i32
  }
}

</mosaic_0001>

<bundles_post_ra>
// kernel: tpu_custom_call.1
= control target key start
LH: loop header
LB: loop body
LE: loop exit
PB: predicated region body
PF: predicated region fallthrough
CT: control target
= control target key end

     0   :  { %s1299_s0 = inlined_call_operand.hbm [shape: bf16[2,8,128], index: 0, kind: input, shape index: {}]   ;;  %s1300_s1 = inlined_call_operand.hbm [shape: bf16[2,128,128], index: 1, kind: input, shape index: {}]   ;;  %s1301_s2 = inlined_call_operand.hbm [shape: f32[2,8,128], index: 2, kind: input, shape index: {}]   ;;  %s1302_s3 = inlined_call_operand.vmem [shape: f32[2,1,128], index: 3, kind: input, shape index: {}]   ;;  %s1303_s4 = inlined_call_operand.hbm [shape: f32[2,8,128], index: 4, kind: output, shape index: {}]  }
   0x1   :  { %1306 = sst [smem:[#allocation19_spill]] %s1300_s1 }
   0x2   :  { %9 = vsyncpa [#allocation7], 0 }
   0x3   :  { %11 = vsyncpa [#allocation7 + $0x1], 0 }
   0x4   :  { %12 = vsyncpa [#allocation10], 0 }
   0x5   :  { %14 = vsyncpa [#allocation10 + $0x1], 0 }
   0x6   :  { %15 = vsyncpa [#allocation8], 0 }
   0x7   :  { %17 = vsyncpa [#allocation8 + $0x1], 0  ;;  %s1095_s15 = smov 0   ;;  %s1097_s16 = smov 0  }
   0x8   :  { %s1099_s17 = smov 0   ;;  %s1101_s18 = smov 0  }
   0x9   :  { %s1103_s19 = smov 0   ;;  %s1105_s20 = smov 0  }
   0xa LB: > { %1307 = sst [smem:[#allocation16_spill]] %s1047_s17  ;;  %s1126_s21 = sadd.s32 4294967295, %s1059_s20   ;;  %s1059_s20 = sphi %s1105_s20, %s23_s20   ;;  %s1055_s19 = sphi %s1103_s19, %s1324_s19   ;;  %s1051_s18 = sphi %s1101_s18, %s1323_s18   ;;  %s1047_s17 = sphi %s1099_s17, %s1319_s17   ;;  %s1043_s16 = sphi %s1097_s16, %s1322_s16   ;;  %s1039_s15 = sphi %s1095_s15, %s1321_s15  }
   0xb   : > { %s708_s22 = sadd.s32 4294967294, %s1059_s20   ;;  %s35_s23 = sadd.s32 1, %s1055_s19 }
   0xc   : > { %s44_s24 = sadd.s32 1, %s1047_s17  ;;  %p37_p0 = scmp.ge.s32.totalorder %s35_s23, 2 }
   0xd   : > { %p51_p1 = scmp.ne.s32.totalorder %s1047_s17, %s1043_s16  ;;  %p52_p2 = scmp.eq.s32.totalorder %s1059_s20, 0 }
   0xe   : > { %p57_p3 = scmp.ne.s32.totalorder %s1043_s16, %s1039_s15  ;;  %s1326_s23 = smov (%p37_p0, %s35_s23), 0 }
   0xf   : > { %1308 = sst [smem:[#allocation17_spill]] %s1326_s23  ;;  %p1138_p4 = por %p52_p2, %p51_p1 }
  0x10   : > { %p58_p5 = scmp.eq.s32.totalorder %s1126_s21, 0  ;;  %s39_s26 = ssub.s32 %s1055_s19, %s1326_s23 }
  0x11   : > { %p161_p6 = scmp.eq.s32.totalorder %s1126_s21, 1  ;;  %p42_p7 = scmp.eq.s32.totalorder %s39_s26, 0 }
  0x12   : > { %p1146_p8 = por %p58_p5, %p57_p3  ;;  %p167_p10 = scmp.eq.s32.totalorder %s708_s22, 1 }
  0x13   : > { %p1150_p9 = por %p161_p6, %p51_p1  ;;  %p818_p13 = scmp.lt.s32.totalorder %s1059_s20, 2 }
  0x14   : > { %s1155_s29 = scalar_select %p42_p7, %s1047_s17, %s44_s24  }
  0x15   : > { %p1157_p11 = por %p167_p10, %p57_p3  ;;  %s1164_s5 = sand.u32 1, %s1047_s17  }
  0x16   : > { %1312 = sst [smem:[#allocation18_spill]] %s1155_s29  ;;  %s206_s6 = sand.u32 1, %s1059_s20  }
  0x17   : > { %s713_s7 = sshll.u32 %s1164_s5, 6  ;;  %p1170_p0 = pnand %p818_p13, %p1138_p4 }
  0x18   : > { %s737_s9 = sshll.u32 %s1055_s19, 10  ;;  %s1315_s1 = sld [smem:[#allocation19_spill]] }
  0x19   : > { %s210_s13 = scalar_lea.vmem [#allocation9], %s713_s7  ;;  %s1178_s22 = scalar_lea.sflag [#allocation10], %s206_s6 }
  0x1a   : > { %s219_s14 = sshll.u32 %s210_s13, 4  ;;  %p893_p1 = pneg %p1170_p0  ;;  %s220_s14 = int_to_ptr.vmem [resolvable:$true] %s219_s14 }
  0x1b   : > { %s904_s24 = scalar_lea.vmem %s220_s14, 1024  ;;  %s1061_s25 = smov [#allocation9]  }
  0x1c   : > { %p905_p2 = scmp.ne.s32.totalorder %s220_s14, %s904_s24  ;;  %s909_s26 = sshll.u32 %s1061_s25, 4  ;;  %s910_s26 = int_to_ptr.vmem [resolvable:$false] %s909_s26 }
  0x1d   : > { %s911_s23 = scalar_lea.vmem %s910_s26, 2048  ;;  %p912_p5 = scmp.lt.s32.totalorder %s220_s14, %s910_s26 }
  0x1e   : > { %s218_s12 = scalar_lea.hbm %s1315_s1, %s737_s9  ;;  %p907_p3 = pnand %p905_p2, %p893_p1 }
  0x1f   : > { %p913_p6 = scmp.lt.s32.totalorder %s911_s23, %s904_s24 }
  0x20   : > { %p908_p4 = pneg %p907_p3 }
  0x21   : > { %p914_p7 = por %p913_p6, %p912_p5 }
  0x23   : > { %p915_p10 = pnand %p914_p7, %p908_p4 }
  0x25   : > { %918 = shalt.err (!%p915_p10)
}
  0x26   : > { %s1062_s7 = smov 64   ;;  %s1063_s6 = smov 4  }
  0x27   : > { %810 = dma.hbm_to_vmem [thread:$0]  (!%p1170_p0), %s218_s12, 1024, %s220_s14, %s1178_s22, %s1062_s7, %s1062_s7, %s1063_s6  }
  0x28   : > { %p718_p13 = scmp.ge.s32.totalorder %s1059_s20, 1  ;;  %p251_p2 = scmp.lt.s32.totalorder %s1059_s20, 3 }
  0x29   : > { %s711_s9 = sshll.u32 %s1164_s5, 2  ;;  %s712_s10 = sshll.u32 %s1055_s19, 6 }
  0x2a   : > { %p1190_p3 = pnand %p718_p13, %p251_p2  ;;  %s197_s24 = scalar_lea.hbm %s1299_s0, %s712_s10 }
  0x2b   : > { %s191_s25 = scalar_lea.vmem [#allocation6], %s711_s9  ;;  %s716_s1 = sshll.u32 %s1164_s5, 3 }
  0x2c   : > { %s199_s26 = sshll.u32 %s191_s25, 4  ;;  %s188_s29 = scalar_lea.sflag [#allocation7], %s1164_s5  ;;  %s200_s26 = int_to_ptr.vmem [resolvable:$true] %s199_s26 }
  0x2d   : > { %s932_s17 = scalar_lea.vmem %s200_s26, 64  ;;  %s1064_s12 = smov [#allocation6]  }
  0x2e   : > { %p933_p4 = scmp.ne.s32.totalorder %s200_s26, %s932_s17  ;;  %s937_s14 = sshll.u32 %s1064_s12, 4  ;;  %s938_s14 = int_to_ptr.vmem [resolvable:$false] %s937_s14 }
  0x2f   : > { %s939_s7 = scalar_lea.vmem %s938_s14, 128  ;;  %p940_p7 = scmp.lt.s32.totalorder %s200_s26, %s938_s14 }
  0x30   : > { %p935_p5 = pnand %p933_p4, %p893_p1  ;;  %p941_p10 = scmp.lt.s32.totalorder %s939_s7, %s932_s17 }
  0x32   : > { %p936_p6 = pneg %p935_p5  ;;  %p942_p13 = por %p941_p10, %p940_p7 }
  0x34   : > { %p943_p2 = pnand %p942_p13, %p936_p6 }
  0x36   : > { %946 = shalt.err (!%p943_p2)
}
  0x37   : > { %807 = dma.hbm_to_vmem [thread:$0]  (!%p1170_p0), %s197_s24, 64, %s200_s26, %s188_s29  }
  0x38   : > { %s717_s5 = sshll.u32 %s1055_s19, 7  ;;  %s233_s6 = scalar_lea.vmem [#allocation11], %s716_s1 }
  0x39   : > { %s240_s9 = sshll.u32 %s233_s6, 4  ;;  %s238_s13 = scalar_lea.hbm %s1301_s2, %s717_s5  ;;  %s241_s9 = int_to_ptr.vmem [resolvable:$true] %s240_s9 }
  0x3a   : > { %s960_s25 = scalar_lea.vmem %s241_s9, 128  ;;  %s1065_s17 = smov [#allocation11]  }
  0x3b   : > { %p961_p4 = scmp.ne.s32.totalorder %s241_s9, %s960_s25  ;;  %s965_s12 = sshll.u32 %s1065_s17, 4  ;;  %s966_s12 = int_to_ptr.vmem [resolvable:$false] %s965_s12 }
  0x3c   : > { %s967_s14 = scalar_lea.vmem %s966_s12, 256  ;;  %p968_p7 = scmp.lt.s32.totalorder %s241_s9, %s966_s12 }
  0x3d   : > { %p963_p5 = pnand %p961_p4, %p893_p1  ;;  %p969_p10 = scmp.lt.s32.totalorder %s967_s14, %s960_s25 }
  0x3f   : > { %p964_p6 = pneg %p963_p5  ;;  %p970_p13 = por %p969_p10, %p968_p7 }
  0x41   : > { %p971_p2 = pnand %p970_p13, %p964_p6 }
  0x43   : > { %974 = shalt.err (!%p971_p2)
}
  0x44   : > { %813 = dma.hbm_to_vmem [thread:$0]  (!%p1170_p0), %s238_s13, 128, %s241_s9, %s1178_s22  }
  0x45   : > { %255 = sbr.rel (%p1190_p3) target bundleno = 435 (0x1b3), region = 36  ;;  %s1219_s1 = sand.u32 (!%p1190_p3), 1, %s1043_s16  }
  0x46   : > { %s719_s29 = sshll.u32 (!%p1190_p3), %s1219_s1, 2  ;;  %s258_s24 = scalar_lea.sflag (!%p1190_p3), [#allocation7], %s1219_s1 }
  0x47   : > { %s261_s26 = scalar_lea.vmem (!%p1190_p3), [#allocation6], %s719_s29 }
  0x4a   : > { %1026 = dma.done.wait (%p1146_p8), %s258_s24, 64  }
  0x4b   : > { %1028 = vsyncadd (%p1146_p8), %s258_s24, 4294967232  ;;  %s266_s8 = sand.u32 1, %s1126_s21   ;;  %s720_s22 = sshll.u32 %s1219_s1, 6 }
  0x4c   : > { %s267_s23 = scalar_lea.sflag [#allocation10], %s266_s8  ;;  %s1229_s7 = scalar_lea.vmem [#allocation9], %s720_s22 }
  0x4d   : > { %1030 = dma.done.wait (%p1146_p8), %s267_s23, 1152  }
  0x4e   : > { %1032 = vsyncadd (%p1146_p8), %s267_s23, 4294966144  ;;  %vm328_vm0 = vcmask 7168   ;;  %v1066_v0 = vmov 0.0   ;;  %vm1067_vm1 = vmmov 0   ;;  %v331_v1 = vld [vmem:[%s261_s26] sm:$0xf] }
  0x4f   : > { %756 = vmatprep.subr.bf16.mxu0 %v1066_v0  ;;  %776 = vmatprep.subr.bf16.mxu1 %v1066_v0  ;;  %330 = vst.msk [vmem:[#allocation5] sm:$0xff] %vm328_vm0, %v1066_v0  ;;  %329 = vst.msk [vmem:[#allocation4] sm:$0xff] %vm328_vm0, %v1066_v0  ;;  %v1237_v2 = vunpack.c.l.bf16 %v331_v1  ;;  %v875_v3 = vld [vmem:[%s1229_s7 + $0x38] sm:$0xff]   ;;  %v876_v5 = vld [vmem:[%s1229_s7 + $0x30] sm:$0xff]   ;;  %v1068_v32 = vmov 0   ;;  %p318_p8 = scmp.lt.s32.totalorder %s1051_s18, 1 }
  0x50   : > { %772 = vmatprep.mubr.msk.bf16.mxu0 %vm1067_vm1, %v1066_v0  ;;  %792 = vmatprep.mubr.msk.bf16.mxu1 %vm1067_vm1, %v1066_v0  ;;  %v877_v8 = vld [vmem:[%s1229_s7 + $0x28] sm:$0xff]   ;;  %v878_v9 = vld [vmem:[%s1229_s7 + $0x20] sm:$0xff]   ;;  %v879_v10 = vld [vmem:[%s1229_s7 + $0x18] sm:$0xff]   ;;  %s721_s9 = sshll.u32 %s1219_s1, 3  ;;  %s734_s11 = sshll.u32 %s1051_s18, 7 }
  0x51   : > { %v349_v4 = vand.u32 2147483647, %v1237_v2  ;;  %757 = vmatpush3.bf16.msra.mxu0 %v875_v3  ;;  %777 = vmatpush3.bf16.msra.mxu1 %v875_v3  ;;  %v880_v11 = vld [vmem:[%s1229_s7 + $0x10] sm:$0xff]   ;;  %v881_v14 = vld [vmem:[%s1229_s7 + $0x8] sm:$0xff]   ;;  %v370_v15 = vmul.f32 -0.0078125, %v1237_v2  ;;  %v882_v16 = vld [vmem:[%s1229_s7] sm:$0xff]   ;;  %s571_s14 = scalar_lea.hbm %s1303_s4, %s734_s11 }
  0x52   : > { %758 = vmatprep.subr.bf16.mxu0 %v1066_v0  ;;  %778 = vmatprep.subr.bf16.mxu1 %v1066_v0  ;;  %vm366_vm2 = vcmp.ge.f32.partialorder %v1237_v2, 0.0  ;;  %v353_v25 = vmax.f32 %v1237_v2, 0.0  ;;  %s319_s21 = scalar_select %p318_p8, %s1051_s18, 1 }
  0x53   : > { %v350_v6 = vsub.f32 0.0, %v349_v4  ;;  %v371_v18 = vpack.c.bf16 %v370_v15, %v370_v15  ;;  %873 = vset.pattern.permute.xlu1 %v1068_v32  ;;  %874 = vset.pattern.permute.xlu0 %v1068_v32  ;;  %s279_s10 = scalar_lea.vmem [#allocation11], %s721_s9  ;;  %s316_s13 = scalar_lea.vmem [#allocation12], %s721_s9 }
  0x54   : > { %s320_s6 = scalar_lea.vmem %s1302_s3, %s319_s21  ;;  %v553_v59 = vld [vmem:[%s279_s10] sm:$0xff]  ;;  %s573_s25 = sshll.u32 %s316_s13, 4  ;;  %s574_s25 = int_to_ptr.vmem [resolvable:$true] %s573_s25 }
  0x55   : > { %v351_v7 = vmul.f32 1.442695, %v350_v6  ;;  %759 = vmatpush3.bf16.msra.mxu0 %v876_v5  ;;  %779 = vmatpush3.bf16.msra.mxu1 %v876_v5  ;;  %v731_v50 = vld [vmem:[%s320_s6] ss:$0 sm:$0xff]  ;;  %v554_v63 = vmul.f32 2.0, %v553_v59  ;;  %s560_s29 = scalar_lea.sflag [#allocation8], %s1219_s1 }
  0x56   : > { %760 = vmatprep.subr.bf16.mxu0 %v1066_v0  ;;  %780 = vmatprep.subr.bf16.mxu1 %v1066_v0  ;;  %v514_v33 = vld [vmem:[#allocation5] sm:$0xff]  ;;  %v507_v37 = vld [vmem:[#allocation4] sm:$0xff]  ;;  %s975_s24 = scalar_lea.vmem %s574_s25, 128  ;;  %s1069_s26 = smov [#allocation12]  }
  0x57   : > { %883 = vpow2.f32 %v351_v7  ;;  %p976_p0 = scmp.ne.s32.totalorder %s574_s25, %s975_s24  ;;  %s979_s8 = sshll.u32 %s1069_s26, 4  ;;  %s980_s8 = int_to_ptr.vmem [resolvable:$false] %s979_s8 }
  0x58   : > { %s981_s18 = scalar_lea.vmem %s980_s8, 256  ;;  %p982_p4 = scmp.lt.s32.totalorder %s574_s25, %s980_s8 }
  0x59   : > { %761 = vmatpush3.bf16.msra.mxu0 %v877_v8  ;;  %781 = vmatpush3.bf16.msra.mxu1 %v877_v8  ;;  %p977_p1 = pnand %p976_p0, %p1150_p9  ;;  %p983_p5 = scmp.lt.s32.totalorder %s981_s18, %s975_s24 }
  0x5a   : > { %762 = vmatprep.subr.bf16.mxu0 %v1066_v0  ;;  %782 = vmatprep.subr.bf16.mxu1 %v1066_v0 }
  0x5b   : > { %p978_p3 = pneg %p977_p1  ;;  %p984_p6 = por %p983_p5, %p982_p4 }
  0x5d   : > { %763 = vmatpush3.bf16.msra.mxu0 %v878_v9  ;;  %783 = vmatpush3.bf16.msra.mxu1 %v878_v9  ;;  %p985_p7 = pnand %p984_p6, %p978_p3 }
  0x5e   : > { %764 = vmatprep.subr.bf16.mxu0 %v1066_v0  ;;  %784 = vmatprep.subr.bf16.mxu1 %v1066_v0 }
  0x61   : > { %765 = vmatpush3.bf16.msra.mxu0 %v879_v10  ;;  %785 = vmatpush3.bf16.msra.mxu1 %v879_v10 }
  0x62   : > { %766 = vmatprep.subr.bf16.mxu0 %v1066_v0  ;;  %786 = vmatprep.subr.bf16.mxu1 %v1066_v0 }
  0x64   : > { %v884_v12 = vpop.eup %883 }
  0x65   : > { %v354_v13 = vadd.f32 1.0, %v884_v12  ;;  %767 = vmatpush3.bf16.msra.mxu0 %v880_v11  ;;  %787 = vmatpush3.bf16.msra.mxu1 %v880_v11  ;;  %v357_v17 = vmul.f32 -0.5, %v884_v12  ;;  %v360_v20 = vand.u32 2147483647, %v884_v12 }
  0x66   : > { %768 = vmatprep.subr.bf16.mxu0 %v1066_v0  ;;  %788 = vmatprep.subr.bf16.mxu1 %v1066_v0 }
  0x67   : > { %885 = vrcp.f32 %v354_v13  ;;  %v358_v19 = vadd.f32 1.0, %v357_v17  ;;  %vm361_vm3 = vcmp.lt.f32.partialorder %v360_v20, 0.0004427343 }
  0x68   : > { %887 = vlog2.f32 %v354_v13 }
  0x69   : > { %769 = vmatpush3.bf16.msra.mxu0 %v881_v14  ;;  %789 = vmatpush3.bf16.msra.mxu1 %v881_v14  ;;  %v359_v22 = vmul.f32 %v884_v12, %v358_v19 }
  0x6a   : > { %770 = vmatprep.subr.bf16.mxu0 %v1066_v0  ;;  %790 = vmatprep.subr.bf16.mxu1 %v1066_v0 }
  0x6d   : > { %771 = vmatpush3.bf16.msra.mxu0 %v882_v16  ;;  %791 = vmatpush3.bf16.msra.mxu1 %v882_v16 }
  0x70   : > { %773 = vmatmul.mubr.bf16.vlgmr.msra.gmra.mxu0 %v371_v18 }
  0x74   : > { %v886_v21 = vpop.eup %885 }
  0x75   : > { %v888_v23 = vpop.eup %887  ;;  %v367_v24 = vmul.f32 %v886_v21, %v884_v12 }
  0x76   : > { %v356_v26 = vmul.f32 0.6931472, %v888_v23 }
  0x77   : > { %v368_v27 = vsel %vm366_vm2, %v886_v21, %v367_v24 }
  0x78   : > { %515 = vadd.xlane.f32.xlu0 %v368_v27  ;;  %v463_v28 = vmul.f32 2.0, %v368_v27  ;;  %v362_v29 = vsel %vm361_vm3, %v359_v22, %v356_v26 }
  0x79   : > { %v363_v30 = vadd.f32 %v362_v29, %v353_v25 }
  0x7a   : > { %v464_v31 = vpack.c.bf16 %v463_v28, %v463_v28 }
  0x7c   : > { %508 = vadd.xlane.f32.xlu0 %v363_v30  ;;  %793 = vmatmul.mubr.bf16.vlgmr.msra.gmra.mxu1 %v464_v31 }
 0x101   : > { %v516_v34 = vpop.xlane.xlu0 %515 }
 0x102   : > { %v517_v35 = vadd.f32 %v516_v34, %v514_v33 }
 0x104   : > { %518 = vst.msk [vmem:[#allocation5] sm:$0xff] %vm328_vm0, %v517_v35 }
 0x105   : > { %v509_v36 = vpop.xlane.xlu0 %508 }
 0x106   : > { %v510_v38 = vmul.f32 0.0078125, %v509_v36 }
 0x108   : > { %v511_v39 = vadd.f32 %v510_v38, %v507_v37 }
 0x10a   : > { %513 = vst.msk [vmem:[#allocation4] sm:$0xff] %vm328_vm0, %v511_v39 }
 0x10b   : > { %v531_v40 = vld [vmem:[#allocation5] sm:$0xff] }
 0x10c   : > { %534 = vperm.xlu1 %873, %v531_v40  }
 0x111   : > { %v524_v41 = vld [vmem:[#allocation4] sm:$0xff] }
 0x112   : > { %527 = vperm.xlu1 %873, %v524_v41  }
 0x130   : > { %v454_v42 = vpop.f32.mrf.mxu0 }
 0x132   : > { %v774_v43 = vpop.f32.mrf.mxu0 }
 0x134   : > { %v457_v44 = vpop.f32.mrf.mxu0 }
 0x136   : > { %v775_v45 = vpop.f32.mrf.mxu0 }
 0x13c   : > { %v499_v46 = vpop.f32.mrf.mxu1 }
 0x13d   : > { %v545_v54 = vadd.f32 1.0, %v499_v46 }
 0x13e   : > { %v794_v47 = vpop.f32.mrf.mxu1 }
 0x140   : > { %v502_v48 = vpop.f32.mrf.mxu1 }
 0x142   : > { %v795_v49 = vpop.f32.mrf.mxu1 }
 0x187   : > { %v535_v51 = vpop.permute.xlu1 %534 }
 0x188   : > { %v543_v52 = vadd.f32 %v731_v50, %v535_v51 }
 0x18a   : > { %v546_v53 = vadd.f32 1.0, %v543_v52 }
 0x18c   : > { %889 = vrcp.f32 %v546_v53 }
 0x18d   : > { %v528_v55 = vpop.permute.xlu1 %527 }
 0x18e   : > { %v530_v57 = vadd.f32 %v528_v55, %v454_v42 }
 0x190   : > { %v550_v61 = vmul.f32 5.0, %v530_v57 }
 0x199   : > { %v890_v56 = vpop.eup %889 }
 0x19a   : > { %v548_v58 = vmul.f32 %v890_v56, %v545_v54 }
 0x19c   : > { %v549_v60 = vsub.f32 1.0, %v548_v58 }
 0x19e   : > { %v551_v62 = vmul.f32 5.0, %v549_v60 }
 0x1a0   : > { %v552_v0 = vadd.f32 %v551_v62, %v550_v61 }
 0x1a2   : > { %v555_v1 = vadd.f32 %v554_v63, %v552_v0 }
 0x1a4   : > { %v732_v2 = vclamps-f32 %v555_v1, 1e+10 }
 0x1a6   : > { %558 = vst [vmem:[%s316_s13] sm:$0xff] %v732_v2 }
 0x1a7   : > { %988 = shalt.err (!%p985_p7)
}
 0x1a8   : > { %s989_s22 = scalar_lea.hbm %s571_s14, 128  ;;  %s993_s7 = scalar_lea.hbm %s1303_s4, 256 }
 0x1a9   : > { %p990_p10 = scmp.ne.s32.totalorder %s571_s14, %s989_s22  ;;  %p994_p8 = scmp.lt.s32.totalorder %s571_s14, %s1303_s4 }
 0x1aa   : > { %p995_p0 = scmp.lt.s32.totalorder %s993_s7, %s989_s22 }
 0x1ab   : > { %p991_p13 = pnand %p990_p10, %p1150_p9 }
 0x1ac   : > { %p996_p1 = por %p995_p0, %p994_p8 }
 0x1ad   : > { %p992_p2 = pneg %p991_p13 }
 0x1af   : > { %p997_p12 = pnand %p996_p1, %p992_p2 }
 0x1b1   : > { %1000 = shalt.err (!%p997_p12)
}
 0x1b2   : > { %802 = dma.vmem_to_hbm [thread:$0]  (%p1150_p9), %s574_s25, 128, %s571_s14, %s560_s29  }
 0x1b3 PF: > { %s585_s5 = sand.u32 1, %s1039_s15   ;;  %p1317_p3 = scmp.ge.s32.totalorder %s1059_s20, 2 }
 0x1b4   : > { %s586_s6 = scalar_lea.sflag [#allocation8], %s585_s5 }
 0x1b5   : > { %p815_p4 = pnand %p1317_p3, %p1157_p11 }
 0x1b7   : > { %p816_p5 = pneg %p815_p4 }
 0x1b9   : > { %1034 = dma.done.wait (%p816_p5), %s586_s6, 128  }
 0x1ba   : > { %1036 = vsyncadd (%p816_p5), %s586_s6, 4294967168  ;;  %s23_s20 = sadd.s32 1, %s1059_s20   ;;  %s1318_s9 = sld [smem:[#allocation16_spill]] }
 0x1bb   : > { %p20_p6 = scmp.ge.s32.totalorder %s23_s20, 4   ;;  %s1319_s17 = sld [smem:[#allocation18_spill]] }
 0x1bc   : > { %s1320_s28 = sld [smem:[#allocation17_spill]]  ;;  %s1321_s15 = smov %s1043_s16 }
 0x1bd   : > { %s1323_s18 = smov %s1055_s19 }
 0x1be   :  { %22 = sbr.rel (!%p20_p6) target bundleno = 10 (0xa), region = 116 }
 0x1c0   : > { %s1322_s16 = smov %s1318_s9 }
 0x1c2   : > { %s1324_s19 = smov %s1320_s28 }
 0x1c3   :  { %591 = vsyncpa [#allocation7], 1 }
 0x1c4   :  { %593 = vsyncpa [#allocation7 + $0x1], 1 }
 0x1c5   :  { %594 = vsyncpa [#allocation10], 1 }
 0x1c6   :  { %596 = vsyncpa [#allocation10 + $0x1], 1 }
 0x1c7   :  { %597 = vsyncpa [#allocation8], 1 }
 0x1c8   :  { %599 = vsyncpa [#allocation8 + $0x1], 1 }

</bundles_post_ra>
